<compile_context>
chip_gen: v7x
topology: tpu7x:2x2x1
jax: 0.10.0
libtpu: 0.0.40
codegen_flags: <defaults>
</compile_context>

<pallas_src>
import functools

import jax
import jax.numpy as jnp
from jax import lax
from jax.experimental import pallas as pl
from jax.experimental.pallas import tpu as pltpu


def _lstm_kernel(x_ref, wih_ref, whh_ref, b_ref, wlin_ref, blin_ref,
                 out_ref, gx_ref, h_ref, *, T, B, H):
    """Full LSTM forward in one kernel invocation (no grid).

    x_ref   : (T*B, Dp)  time-major flattened, feature-padded input     (VMEM)
    wih_ref : (Dp, 4H)   input->gate weights (transposed, padded)
    whh_ref : (H, 4H)    hidden->gate weights (transposed)
    b_ref   : (1, 4H)    b_ih + b_hh
    wlin_ref: (H, Np)    head weights (transposed, x10000 scale folded, lane-padded)
    blin_ref: (1, Np)    head bias  (scale folded, lane-padded)
    out_ref : (T*B, Np)  lane-dense output
    gx_ref  : (T*B, 4H)  VMEM scratch: precomputed input projections
    h_ref   : (T*B, H)   VMEM scratch: all hidden states
    """
    # 1) Hoisted input projection for all timesteps: one MXU matmul + bias add.
    gx_ref[...] = (
        jnp.dot(x_ref[...], wih_ref[...], preferred_element_type=jnp.float32)
        + b_ref[...]
    )

    whh = whh_ref[...]
    h = jnp.zeros((B, H), jnp.float32)
    c = jnp.zeros((B, H), jnp.float32)

    # 2) Fully unrolled recurrence (T static, small). Gate order is PyTorch's
    #    [i, f, g, o]; sigmoid/tanh are applied once each over the full 4H-wide
    #    (128-lane) gate vector, then sliced.
    for t in range(T):
        gates = gx_ref[t * B:(t + 1) * B, :] + jnp.dot(
            h, whh, preferred_element_type=jnp.float32)           # (B, 4H)
        sig = jax.nn.sigmoid(gates)      # one EUP pass covers i, f, o
        tnh = jnp.tanh(gates)            # one EUP pass covers g
        i_g = sig[:, 0:H]
        f_g = sig[:, H:2 * H]
        g_g = tnh[:, 2 * H:3 * H]
        o_g = sig[:, 3 * H:4 * H]
        c = f_g * c + i_g * g_g
        h = o_g * jnp.tanh(c)
        h_ref[t * B:(t + 1) * B, :] = h   # store off the critical path

    # 3) Hoisted head: ReLU -> Linear (x10000 folded into weights/bias) ->
    #    a single lane-dense store for all timesteps.
    y = jnp.maximum(h_ref[...], 0.0)
    out_ref[...] = (
        jnp.dot(y, wlin_ref[...], preferred_element_type=jnp.float32)
        + blin_ref[...]
    ).astype(out_ref.dtype)


@jax.jit
def lstm_forward(x, W_ih, W_hh, b_ih, b_hh, W_lin, b_lin):
    """x: (S0, S1, D) float32. Returns (S0, S1, 6) float32."""
    S0, S1, D = x.shape
    H = W_hh.shape[1]
    T, B = S0, S1
    N_out = W_lin.shape[0]
    Np = 128  # lane-dense padded output width

    # PyTorch `.view(size(1), size(0), -1)` == row-major reshape -> (B=S1, T=S0, D)
    # batch_first; the recurrence runs time-major, so transpose to (T, B, D) and
    # flatten to (T*B, D) for the hoisted input projection.
    x_tm = jnp.transpose(x.reshape(S1, S0, D), (1, 0, 2))          # (T, B, D)
    Dp = max(32, -(-D // 8) * 8)
    x_flat = jnp.pad(x_tm.reshape(T * B, D), ((0, 0), (0, Dp - D)))  # (T*B, Dp)

    wih = jnp.pad(W_ih.T, ((0, Dp - D), (0, 0)))                   # (Dp, 4H)
    whh = W_hh.T                                                   # (H, 4H)
    b = (b_ih + b_hh).reshape(1, 4 * H)                            # (1, 4H)

    # Fold `out[:, :, :3] *= 10000` into the head weights/bias; lane-pad to 128.
    scale = jnp.where(jnp.arange(N_out) < 3, 10000.0, 1.0).astype(jnp.float32)
    wlin = jnp.pad((W_lin * scale[:, None]).T, ((0, 0), (0, Np - N_out)))  # (H, Np)
    blin = jnp.pad((b_lin * scale).reshape(1, N_out), ((0, 0), (0, Np - N_out)))

    vmem = pl.BlockSpec(memory_space=pltpu.MemorySpace.VMEM)
    out_padded = pl.pallas_call(
        functools.partial(_lstm_kernel, T=T, B=B, H=H),
        out_shape=jax.ShapeDtypeStruct((T * B, Np), jnp.float32),
        in_specs=[vmem] * 6,
        out_specs=vmem,
        scratch_shapes=[
            pltpu.VMEM((T * B, 4 * H), jnp.float32),   # precomputed input gates
            pltpu.VMEM((T * B, H), jnp.float32),       # all hidden states
        ],
    )(x_flat, wih, whh, b, wlin, blin)

    # Un-pad the lane dim; rows are (t, b) so this is already (S0, S1, 6).
    return out_padded.reshape(T, B, Np)[:, :, :N_out]


def reference_forward(x, W_ih, W_hh, b_ih, b_hh, W_lin, b_lin):
    """Pure-JAX reference replicating the PyTorch forward (eval mode)."""
    S0, S1, D = x.shape
    H = W_hh.shape[1]
    x_v = x.reshape(S1, S0, D)                     # batch_first (B, T, D)

    def step(carry, x_t):
        h, c = carry
        gates = x_t @ W_ih.T + b_ih + h @ W_hh.T + b_hh
        i_g, f_g, g_g, o_g = jnp.split(gates, 4, axis=-1)
        i_g, f_g, o_g = jax.nn.sigmoid(i_g), jax.nn.sigmoid(f_g), jax.nn.sigmoid(o_g)
        g_g = jnp.tanh(g_g)
        c = f_g * c + i_g * g_g
        h = o_g * jnp.tanh(c)
        return (h, c), h

    x_time_major = jnp.transpose(x_v, (1, 0, 2))   # (T, B, D)
    init = (jnp.zeros((S1, H), jnp.float32), jnp.zeros((S1, H), jnp.float32))
    _, hs = lax.scan(step, init, x_time_major)     # (T, B, H) == permute(1,0,2)
    out = jnp.maximum(hs, 0.0) @ W_lin.T + b_lin   # (T, B, 6)
    scale = jnp.where(jnp.arange(6) < 3, 10000.0, 1.0)
    return out * scale


if __name__ == "__main__":
    hidden_dim = 32
    input_dim = 19
    seq_len = 8    # S0
    batch = 4      # S1

    key = jax.random.PRNGKey(0)
    ks = jax.random.split(key, 7)
    k = 1.0 / (hidden_dim ** 0.5)
    W_ih = jax.random.uniform(ks[0], (4 * hidden_dim, input_dim), jnp.float32, -k, k)
    W_hh = jax.random.uniform(ks[1], (4 * hidden_dim, hidden_dim), jnp.float32, -k, k)
    b_ih = jax.random.uniform(ks[2], (4 * hidden_dim,), jnp.float32, -k, k)
    b_hh = jax.random.uniform(ks[3], (4 * hidden_dim,), jnp.float32, -k, k)
    W_lin = jax.random.uniform(ks[4], (6, hidden_dim), jnp.float32, -k, k)
    b_lin = jax.random.uniform(ks[5], (6,), jnp.float32, -k, k)

    x = jax.random.normal(ks[6], (seq_len, batch, input_dim), jnp.float32)

    out = lstm_forward(x, W_ih, W_hh, b_ih, b_hh, W_lin, b_lin)
    out = jax.block_until_ready(out)

    ref = reference_forward(x, W_ih, W_hh, b_ih, b_hh, W_lin, b_lin)
    assert out.shape == (seq_len, batch, 6), out.shape
    assert jnp.allclose(out, ref, rtol=1e-3, atol=1e-2), float(jnp.max(jnp.abs(out - ref)))

    print("KERNEL_OK")
</pallas_src>

<mosaic_0001>
module attributes {stable_mosaic.version = 11 : i64} {
  func.func @_lstm_kernel(%arg0: memref<32x32xf32, #tpu.memory_space<vmem>>, %arg1: memref<32x128xf32, #tpu.memory_space<vmem>>, %arg2: memref<32x128xf32, #tpu.memory_space<vmem>>, %arg3: memref<1x128xf32, #tpu.memory_space<vmem>>, %arg4: memref<32x128xf32, #tpu.memory_space<vmem>>, %arg5: memref<1x128xf32, #tpu.memory_space<vmem>>, %arg6: memref<32x128xf32, #tpu.memory_space<vmem>>, %arg7: memref<32x128xf32, #tpu.memory_space<vmem>>, %arg8: memref<32x32xf32, #tpu.memory_space<vmem>>) attributes {dimension_semantics = [], scalar_prefetch = 0 : i64, scratch_operands = 2 : i64, tpu.core_type = #tpu.core_type<tc>} {
    %c0 = arith.constant 0 : index
    %c0_0 = arith.constant 0 : index
    %0 = vector.load %arg0[%c0, %c0_0] : memref<32x32xf32, #tpu.memory_space<vmem>>, vector<32x32xf32>
    %c0_1 = arith.constant 0 : index
    %c0_2 = arith.constant 0 : index
    %1 = vector.load %arg1[%c0_1, %c0_2] : memref<32x128xf32, #tpu.memory_space<vmem>>, vector<32x128xf32>
    %cst = arith.constant dense<0.000000e+00> : vector<32x128xf32>
    %2 = tpu.matmul %0, %1, %cst {dimension_numbers = #tpu.dot_dimension_numbers<[1], [0], [0], [1], [0, 0, 1, 1], [], []>} : vector<32x32xf32>, vector<32x128xf32>, vector<32x128xf32> -> vector<32x128xf32>
    %c0_3 = arith.constant 0 : index
    %c0_4 = arith.constant 0 : index
    %3 = vector.load %arg3[%c0_3, %c0_4] : memref<1x128xf32, #tpu.memory_space<vmem>>, vector<1x128xf32>
    %4 = vector.broadcast %3 : vector<1x128xf32> to vector<32x128xf32>
    %5 = arith.addf %2, %4 : vector<32x128xf32>
    %c0_5 = arith.constant 0 : index
    %c0_6 = arith.constant 0 : index
    %6 = vector.load %arg7[%c0_5, %c0_6] : memref<32x128xf32, #tpu.memory_space<vmem>>, vector<32x128xf32>
    tpu.vector_store %arg7[%c0_5, %c0_6], %5 {strides = array<i32>} : memref<32x128xf32, #tpu.memory_space<vmem>>, vector<32x128xf32>,
    %c0_7 = arith.constant 0 : index
    %c0_8 = arith.constant 0 : index
    %7 = vector.load %arg2[%c0_7, %c0_8] : memref<32x128xf32, #tpu.memory_space<vmem>>, vector<32x128xf32>
    %cst_9 = arith.constant 0.000000e+00 : f32
    %8 = vector.broadcast %cst_9 : f32 to vector<4x32xf32>
    %cst_10 = arith.constant 0.000000e+00 : f32
    %9 = vector.broadcast %cst_10 : f32 to vector<4x32xf32>
    %c0_11 = arith.constant 0 : index
    %c0_12 = arith.constant 0 : index
    %10 = vector.load %arg7[%c0_11, %c0_12] : memref<32x128xf32, #tpu.memory_space<vmem>>, vector<4x128xf32>
    %cst_13 = arith.constant dense<0.000000e+00> : vector<4x128xf32>
    %11 = tpu.matmul %8, %7, %cst_13 {dimension_numbers = #tpu.dot_dimension_numbers<[1], [0], [0], [1], [0, 0, 1, 1], [], []>} : vector<4x32xf32>, vector<32x128xf32>, vector<4x128xf32> -> vector<4x128xf32>
    %12 = arith.addf %10, %11 : vector<4x128xf32>
    %13 = arith.negf %12 : vector<4x128xf32>
    %14 = math.exp %13 : vector<4x128xf32>
    %cst_14 = arith.constant 1.000000e+00 : f32
    %15 = vector.broadcast %cst_14 : f32 to vector<4x128xf32>
    %16 = arith.addf %15, %14 : vector<4x128xf32>
    %17 = arith.divf %15, %16 : vector<4x128xf32>
    %18 = math.tanh %12 : vector<4x128xf32>
    %19 = vector.extract_strided_slice %17 {offsets = [0, 0], sizes = [4, 32], strides = [1, 1]} : vector<4x128xf32> to vector<4x32xf32>
    %20 = vector.extract_strided_slice %17 {offsets = [0, 32], sizes = [4, 32], strides = [1, 1]} : vector<4x128xf32> to vector<4x32xf32>
    %21 = vector.extract_strided_slice %18 {offsets = [0, 64], sizes = [4, 32], strides = [1, 1]} : vector<4x128xf32> to vector<4x32xf32>
    %22 = vector.extract_strided_slice %17 {offsets = [0, 96], sizes = [4, 32], strides = [1, 1]} : vector<4x128xf32> to vector<4x32xf32>
    %23 = arith.mulf %20, %9 : vector<4x32xf32>
    %24 = arith.mulf %19, %21 : vector<4x32xf32>
    %25 = arith.addf %23, %24 : vector<4x32xf32>
    %26 = math.tanh %25 : vector<4x32xf32>
    %27 = arith.mulf %22, %26 : vector<4x32xf32>
    %c0_15 = arith.constant 0 : index
    %c0_16 = arith.constant 0 : index
    %28 = vector.load %arg8[%c0_15, %c0_16] : memref<32x32xf32, #tpu.memory_space<vmem>>, vector<4x32xf32>
    tpu.vector_store %arg8[%c0_15, %c0_16], %27 {strides = array<i32>} : memref<32x32xf32, #tpu.memory_space<vmem>>, vector<4x32xf32>,
    %c4 = arith.constant 4 : index
    %c0_17 = arith.constant 0 : index
    %29 = vector.load %arg7[%c4, %c0_17] : memref<32x128xf32, #tpu.memory_space<vmem>>, vector<4x128xf32>
    %cst_18 = arith.constant dense<0.000000e+00> : vector<4x128xf32>
    %30 = tpu.matmul %27, %7, %cst_18 {dimension_numbers = #tpu.dot_dimension_numbers<[1], [0], [0], [1], [0, 0, 1, 1], [], []>} : vector<4x32xf32>, vector<32x128xf32>, vector<4x128xf32> -> vector<4x128xf32>
    %31 = arith.addf %29, %30 : vector<4x128xf32>
    %32 = arith.negf %31 : vector<4x128xf32>
    %33 = math.exp %32 : vector<4x128xf32>
    %cst_19 = arith.constant 1.000000e+00 : f32
    %34 = vector.broadcast %cst_19 : f32 to vector<4x128xf32>
    %35 = arith.addf %34, %33 : vector<4x128xf32>
    %36 = arith.divf %34, %35 : vector<4x128xf32>
    %37 = math.tanh %31 : vector<4x128xf32>
    %38 = vector.extract_strided_slice %36 {offsets = [0, 0], sizes = [4, 32], strides = [1, 1]} : vector<4x128xf32> to vector<4x32xf32>
    %39 = vector.extract_strided_slice %36 {offsets = [0, 32], sizes = [4, 32], strides = [1, 1]} : vector<4x128xf32> to vector<4x32xf32>
    %40 = vector.extract_strided_slice %37 {offsets = [0, 64], sizes = [4, 32], strides = [1, 1]} : vector<4x128xf32> to vector<4x32xf32>
    %41 = vector.extract_strided_slice %36 {offsets = [0, 96], sizes = [4, 32], strides = [1, 1]} : vector<4x128xf32> to vector<4x32xf32>
    %42 = arith.mulf %39, %25 : vector<4x32xf32>
    %43 = arith.mulf %38, %40 : vector<4x32xf32>
    %44 = arith.addf %42, %43 : vector<4x32xf32>
    %45 = math.tanh %44 : vector<4x32xf32>
    %46 = arith.mulf %41, %45 : vector<4x32xf32>
    %c4_20 = arith.constant 4 : index
    %c0_21 = arith.constant 0 : index
    %47 = vector.load %arg8[%c4_20, %c0_21] : memref<32x32xf32, #tpu.memory_space<vmem>>, vector<4x32xf32>
    tpu.vector_store %arg8[%c4_20, %c0_21], %46 {strides = array<i32>} : memref<32x32xf32, #tpu.memory_space<vmem>>, vector<4x32xf32>,
    %c8 = arith.constant 8 : index
    %c0_22 = arith.constant 0 : index
    %48 = vector.load %arg7[%c8, %c0_22] : memref<32x128xf32, #tpu.memory_space<vmem>>, vector<4x128xf32>
    %cst_23 = arith.constant dense<0.000000e+00> : vector<4x128xf32>
    %49 = tpu.matmul %46, %7, %cst_23 {dimension_numbers = #tpu.dot_dimension_numbers<[1], [0], [0], [1], [0, 0, 1, 1], [], []>} : vector<4x32xf32>, vector<32x128xf32>, vector<4x128xf32> -> vector<4x128xf32>
    %50 = arith.addf %48, %49 : vector<4x128xf32>
    %51 = arith.negf %50 : vector<4x128xf32>
    %52 = math.exp %51 : vector<4x128xf32>
    %cst_24 = arith.constant 1.000000e+00 : f32
    %53 = vector.broadcast %cst_24 : f32 to vector<4x128xf32>
    %54 = arith.addf %53, %52 : vector<4x128xf32>
    %55 = arith.divf %53, %54 : vector<4x128xf32>
    %56 = math.tanh %50 : vector<4x128xf32>
    %57 = vector.extract_strided_slice %55 {offsets = [0, 0], sizes = [4, 32], strides = [1, 1]} : vector<4x128xf32> to vector<4x32xf32>
    %58 = vector.extract_strided_slice %55 {offsets = [0, 32], sizes = [4, 32], strides = [1, 1]} : vector<4x128xf32> to vector<4x32xf32>
    %59 = vector.extract_strided_slice %56 {offsets = [0, 64], sizes = [4, 32], strides = [1, 1]} : vector<4x128xf32> to vector<4x32xf32>
    %60 = vector.extract_strided_slice %55 {offsets = [0, 96], sizes = [4, 32], strides = [1, 1]} : vector<4x128xf32> to vector<4x32xf32>
    %61 = arith.mulf %58, %44 : vector<4x32xf32>
    %62 = arith.mulf %57, %59 : vector<4x32xf32>
    %63 = arith.addf %61, %62 : vector<4x32xf32>
    %64 = math.tanh %63 : vector<4x32xf32>
    %65 = arith.mulf %60, %64 : vector<4x32xf32>
    %c8_25 = arith.constant 8 : index
    %c0_26 = arith.constant 0 : index
    %66 = vector.load %arg8[%c8_25, %c0_26] : memref<32x32xf32, #tpu.memory_space<vmem>>, vector<4x32xf32>
    tpu.vector_store %arg8[%c8_25, %c0_26], %65 {strides = array<i32>} : memref<32x32xf32, #tpu.memory_space<vmem>>, vector<4x32xf32>,
    %c12 = arith.constant 12 : index
    %c0_27 = arith.constant 0 : index
    %67 = vector.load %arg7[%c12, %c0_27] : memref<32x128xf32, #tpu.memory_space<vmem>>, vector<4x128xf32>
    %cst_28 = arith.constant dense<0.000000e+00> : vector<4x128xf32>
    %68 = tpu.matmul %65, %7, %cst_28 {dimension_numbers = #tpu.dot_dimension_numbers<[1], [0], [0], [1], [0, 0, 1, 1], [], []>} : vector<4x32xf32>, vector<32x128xf32>, vector<4x128xf32> -> vector<4x128xf32>
    %69 = arith.addf %67, %68 : vector<4x128xf32>
    %70 = arith.negf %69 : vector<4x128xf32>
    %71 = math.exp %70 : vector<4x128xf32>
    %cst_29 = arith.constant 1.000000e+00 : f32
    %72 = vector.broadcast %cst_29 : f32 to vector<4x128xf32>
    %73 = arith.addf %72, %71 : vector<4x128xf32>
    %74 = arith.divf %72, %73 : vector<4x128xf32>
    %75 = math.tanh %69 : vector<4x128xf32>
    %76 = vector.extract_strided_slice %74 {offsets = [0, 0], sizes = [4, 32], strides = [1, 1]} : vector<4x128xf32> to vector<4x32xf32>
    %77 = vector.extract_strided_slice %74 {offsets = [0, 32], sizes = [4, 32], strides = [1, 1]} : vector<4x128xf32> to vector<4x32xf32>
    %78 = vector.extract_strided_slice %75 {offsets = [0, 64], sizes = [4, 32], strides = [1, 1]} : vector<4x128xf32> to vector<4x32xf32>
    %79 = vector.extract_strided_slice %74 {offsets = [0, 96], sizes = [4, 32], strides = [1, 1]} : vector<4x128xf32> to vector<4x32xf32>
    %80 = arith.mulf %77, %63 : vector<4x32xf32>
    %81 = arith.mulf %76, %78 : vector<4x32xf32>
    %82 = arith.addf %80, %81 : vector<4x32xf32>
    %83 = math.tanh %82 : vector<4x32xf32>
    %84 = arith.mulf %79, %83 : vector<4x32xf32>
    %c12_30 = arith.constant 12 : index
    %c0_31 = arith.constant 0 : index
    %85 = vector.load %arg8[%c12_30, %c0_31] : memref<32x32xf32, #tpu.memory_space<vmem>>, vector<4x32xf32>
    tpu.vector_store %arg8[%c12_30, %c0_31], %84 {strides = array<i32>} : memref<32x32xf32, #tpu.memory_space<vmem>>, vector<4x32xf32>,
    %c16 = arith.constant 16 : index
    %c0_32 = arith.constant 0 : index
    %86 = vector.load %arg7[%c16, %c0_32] : memref<32x128xf32, #tpu.memory_space<vmem>>, vector<4x128xf32>
    %cst_33 = arith.constant dense<0.000000e+00> : vector<4x128xf32>
    %87 = tpu.matmul %84, %7, %cst_33 {dimension_numbers = #tpu.dot_dimension_numbers<[1], [0], [0], [1], [0, 0, 1, 1], [], []>} : vector<4x32xf32>, vector<32x128xf32>, vector<4x128xf32> -> vector<4x128xf32>
    %88 = arith.addf %86, %87 : vector<4x128xf32>
    %89 = arith.negf %88 : vector<4x128xf32>
    %90 = math.exp %89 : vector<4x128xf32>
    %cst_34 = arith.constant 1.000000e+00 : f32
    %91 = vector.broadcast %cst_34 : f32 to vector<4x128xf32>
    %92 = arith.addf %91, %90 : vector<4x128xf32>
    %93 = arith.divf %91, %92 : vector<4x128xf32>
    %94 = math.tanh %88 : vector<4x128xf32>
    %95 = vector.extract_strided_slice %93 {offsets = [0, 0], sizes = [4, 32], strides = [1, 1]} : vector<4x128xf32> to vector<4x32xf32>
    %96 = vector.extract_strided_slice %93 {offsets = [0, 32], sizes = [4, 32], strides = [1, 1]} : vector<4x128xf32> to vector<4x32xf32>
    %97 = vector.extract_strided_slice %94 {offsets = [0, 64], sizes = [4, 32], strides = [1, 1]} : vector<4x128xf32> to vector<4x32xf32>
    %98 = vector.extract_strided_slice %93 {offsets = [0, 96], sizes = [4, 32], strides = [1, 1]} : vector<4x128xf32> to vector<4x32xf32>
    %99 = arith.mulf %96, %82 : vector<4x32xf32>
    %100 = arith.mulf %95, %97 : vector<4x32xf32>
    %101 = arith.addf %99, %100 : vector<4x32xf32>
    %102 = math.tanh %101 : vector<4x32xf32>
    %103 = arith.mulf %98, %102 : vector<4x32xf32>
    %c16_35 = arith.constant 16 : index
    %c0_36 = arith.constant 0 : index
    %104 = vector.load %arg8[%c16_35, %c0_36] : memref<32x32xf32, #tpu.memory_space<vmem>>, vector<4x32xf32>
    tpu.vector_store %arg8[%c16_35, %c0_36], %103 {strides = array<i32>} : memref<32x32xf32, #tpu.memory_space<vmem>>, vector<4x32xf32>,
    %c20 = arith.constant 20 : index
    %c0_37 = arith.constant 0 : index
    %105 = vector.load %arg7[%c20, %c0_37] : memref<32x128xf32, #tpu.memory_space<vmem>>, vector<4x128xf32>
    %cst_38 = arith.constant dense<0.000000e+00> : vector<4x128xf32>
    %106 = tpu.matmul %103, %7, %cst_38 {dimension_numbers = #tpu.dot_dimension_numbers<[1], [0], [0], [1], [0, 0, 1, 1], [], []>} : vector<4x32xf32>, vector<32x128xf32>, vector<4x128xf32> -> vector<4x128xf32>
    %107 = arith.addf %105, %106 : vector<4x128xf32>
    %108 = arith.negf %107 : vector<4x128xf32>
    %109 = math.exp %108 : vector<4x128xf32>
    %cst_39 = arith.constant 1.000000e+00 : f32
    %110 = vector.broadcast %cst_39 : f32 to vector<4x128xf32>
    %111 = arith.addf %110, %109 : vector<4x128xf32>
    %112 = arith.divf %110, %111 : vector<4x128xf32>
    %113 = math.tanh %107 : vector<4x128xf32>
    %114 = vector.extract_strided_slice %112 {offsets = [0, 0], sizes = [4, 32], strides = [1, 1]} : vector<4x128xf32> to vector<4x32xf32>
    %115 = vector.extract_strided_slice %112 {offsets = [0, 32], sizes = [4, 32], strides = [1, 1]} : vector<4x128xf32> to vector<4x32xf32>
    %116 = vector.extract_strided_slice %113 {offsets = [0, 64], sizes = [4, 32], strides = [1, 1]} : vector<4x128xf32> to vector<4x32xf32>
    %117 = vector.extract_strided_slice %112 {offsets = [0, 96], sizes = [4, 32], strides = [1, 1]} : vector<4x128xf32> to vector<4x32xf32>
    %118 = arith.mulf %115, %101 : vector<4x32xf32>
    %119 = arith.mulf %114, %116 : vector<4x32xf32>
    %120 = arith.addf %118, %119 : vector<4x32xf32>
    %121 = math.tanh %120 : vector<4x32xf32>
    %122 = arith.mulf %117, %121 : vector<4x32xf32>
    %c20_40 = arith.constant 20 : index
    %c0_41 = arith.constant 0 : index
    %123 = vector.load %arg8[%c20_40, %c0_41] : memref<32x32xf32, #tpu.memory_space<vmem>>, vector<4x32xf32>
    tpu.vector_store %arg8[%c20_40, %c0_41], %122 {strides = array<i32>} : memref<32x32xf32, #tpu.memory_space<vmem>>, vector<4x32xf32>,
    %c24 = arith.constant 24 : index
    %c0_42 = arith.constant 0 : index
    %124 = vector.load %arg7[%c24, %c0_42] : memref<32x128xf32, #tpu.memory_space<vmem>>, vector<4x128xf32>
    %cst_43 = arith.constant dense<0.000000e+00> : vector<4x128xf32>
    %125 = tpu.matmul %122, %7, %cst_43 {dimension_numbers = #tpu.dot_dimension_numbers<[1], [0], [0], [1], [0, 0, 1, 1], [], []>} : vector<4x32xf32>, vector<32x128xf32>, vector<4x128xf32> -> vector<4x128xf32>
    %126 = arith.addf %124, %125 : vector<4x128xf32>
    %127 = arith.negf %126 : vector<4x128xf32>
    %128 = math.exp %127 : vector<4x128xf32>
    %cst_44 = arith.constant 1.000000e+00 : f32
    %129 = vector.broadcast %cst_44 : f32 to vector<4x128xf32>
    %130 = arith.addf %129, %128 : vector<4x128xf32>
    %131 = arith.divf %129, %130 : vector<4x128xf32>
    %132 = math.tanh %126 : vector<4x128xf32>
    %133 = vector.extract_strided_slice %131 {offsets = [0, 0], sizes = [4, 32], strides = [1, 1]} : vector<4x128xf32> to vector<4x32xf32>
    %134 = vector.extract_strided_slice %131 {offsets = [0, 32], sizes = [4, 32], strides = [1, 1]} : vector<4x128xf32> to vector<4x32xf32>
    %135 = vector.extract_strided_slice %132 {offsets = [0, 64], sizes = [4, 32], strides = [1, 1]} : vector<4x128xf32> to vector<4x32xf32>
    %136 = vector.extract_strided_slice %131 {offsets = [0, 96], sizes = [4, 32], strides = [1, 1]} : vector<4x128xf32> to vector<4x32xf32>
    %137 = arith.mulf %134, %120 : vector<4x32xf32>
    %138 = arith.mulf %133, %135 : vector<4x32xf32>
    %139 = arith.addf %137, %138 : vector<4x32xf32>
    %140 = math.tanh %139 : vector<4x32xf32>
    %141 = arith.mulf %136, %140 : vector<4x32xf32>
    %c24_45 = arith.constant 24 : index
    %c0_46 = arith.constant 0 : index
    %142 = vector.load %arg8[%c24_45, %c0_46] : memref<32x32xf32, #tpu.memory_space<vmem>>, vector<4x32xf32>
    tpu.vector_store %arg8[%c24_45, %c0_46], %141 {strides = array<i32>} : memref<32x32xf32, #tpu.memory_space<vmem>>, vector<4x32xf32>,
    %c28 = arith.constant 28 : index
    %c0_47 = arith.constant 0 : index
    %143 = vector.load %arg7[%c28, %c0_47] : memref<32x128xf32, #tpu.memory_space<vmem>>, vector<4x128xf32>
    %cst_48 = arith.constant dense<0.000000e+00> : vector<4x128xf32>
    %144 = tpu.matmul %141, %7, %cst_48 {dimension_numbers = #tpu.dot_dimension_numbers<[1], [0], [0], [1], [0, 0, 1, 1], [], []>} : vector<4x32xf32>, vector<32x128xf32>, vector<4x128xf32> -> vector<4x128xf32>
    %145 = arith.addf %143, %144 : vector<4x128xf32>
    %146 = arith.negf %145 : vector<4x128xf32>
    %147 = math.exp %146 : vector<4x128xf32>
    %cst_49 = arith.constant 1.000000e+00 : f32
    %148 = vector.broadcast %cst_49 : f32 to vector<4x128xf32>
    %149 = arith.addf %148, %147 : vector<4x128xf32>
    %150 = arith.divf %148, %149 : vector<4x128xf32>
    %151 = math.tanh %145 : vector<4x128xf32>
    %152 = vector.extract_strided_slice %150 {offsets = [0, 0], sizes = [4, 32], strides = [1, 1]} : vector<4x128xf32> to vector<4x32xf32>
    %153 = vector.extract_strided_slice %150 {offsets = [0, 32], sizes = [4, 32], strides = [1, 1]} : vector<4x128xf32> to vector<4x32xf32>
    %154 = vector.extract_strided_slice %151 {offsets = [0, 64], sizes = [4, 32], strides = [1, 1]} : vector<4x128xf32> to vector<4x32xf32>
    %155 = vector.extract_strided_slice %150 {offsets = [0, 96], sizes = [4, 32], strides = [1, 1]} : vector<4x128xf32> to vector<4x32xf32>
    %156 = arith.mulf %153, %139 : vector<4x32xf32>
    %157 = arith.mulf %152, %154 : vector<4x32xf32>
    %158 = arith.addf %156, %157 : vector<4x32xf32>
    %159 = math.tanh %158 : vector<4x32xf32>
    %160 = arith.mulf %155, %159 : vector<4x32xf32>
    %c28_50 = arith.constant 28 : index
    %c0_51 = arith.constant 0 : index
    %161 = vector.load %arg8[%c28_50, %c0_51] : memref<32x32xf32, #tpu.memory_space<vmem>>, vector<4x32xf32>
    tpu.vector_store %arg8[%c28_50, %c0_51], %160 {strides = array<i32>} : memref<32x32xf32, #tpu.memory_space<vmem>>, vector<4x32xf32>,
    %c0_52 = arith.constant 0 : index
    %c0_53 = arith.constant 0 : index
    %162 = vector.load %arg8[%c0_52, %c0_53] : memref<32x32xf32, #tpu.memory_space<vmem>>, vector<32x32xf32>
    %cst_54 = arith.constant 0.000000e+00 : f32
    %163 = vector.broadcast %cst_54 : f32 to vector<32x32xf32>
    %164 = arith.maximumf %162, %163 : vector<32x32xf32>
    %c0_55 = arith.constant 0 : index
    %c0_56 = arith.constant 0 : index
    %165 = vector.load %arg4[%c0_55, %c0_56] : memref<32x128xf32, #tpu.memory_space<vmem>>, vector<32x128xf32>
    %cst_57 = arith.constant dense<0.000000e+00> : vector<32x128xf32>
    %166 = tpu.matmul %164, %165, %cst_57 {dimension_numbers = #tpu.dot_dimension_numbers<[1], [0], [0], [1], [0, 0, 1, 1], [], []>} : vector<32x32xf32>, vector<32x128xf32>, vector<32x128xf32> -> vector<32x128xf32>
    %c0_58 = arith.constant 0 : index
    %c0_59 = arith.constant 0 : index
    %167 = vector.load %arg5[%c0_58, %c0_59] : memref<1x128xf32, #tpu.memory_space<vmem>>, vector<1x128xf32>
    %168 = vector.broadcast %167 : vector<1x128xf32> to vector<32x128xf32>
    %169 = arith.addf %166, %168 : vector<32x128xf32>
    %c0_60 = arith.constant 0 : index
    %c0_61 = arith.constant 0 : index
    %170 = vector.load %arg6[%c0_60, %c0_61] : memref<32x128xf32, #tpu.memory_space<vmem>>, vector<32x128xf32>
    tpu.vector_store %arg6[%c0_60, %c0_61], %169 {strides = array<i32>} : memref<32x128xf32, #tpu.memory_space<vmem>>, vector<32x128xf32>,
    return
  }
}

</mosaic_0001>

<bundles_post_ra>
// kernel: lstm_forward.1
= control target key start
LH: loop header
LB: loop body
LE: loop exit
PB: predicated region body
PF: predicated region fallthrough
CT: control target
= control target key end

     0   :  { %vm38_vm0 = vcmask 261120   ;;  %v1424_v3 = vmov 0.0|0.0   ;;  %vm1425_vm1 = vmmov 0   ;;  %v1426_v4 = vmov 0.0   ;;  %s1427_s17 = smov 64   ;;  %s1644_s1 = inlined_call_operand.vmem [shape: f32[32,128], index: 1, kind: input, shape index: {}]   ;;  %s1645_s0 = inlined_call_operand.vmem [shape: f32[32,32], index: 0, kind: input, shape index: {}]   ;;  %s1646_s2 = inlined_call_operand.vmem [shape: f32[32,128], index: 2, kind: input, shape index: {}]   ;;  %s1647_s3 = inlined_call_operand.vmem [shape: f32[1,128], index: 3, kind: input, shape index: {}]   ;;  %s1648_s4 = inlined_call_operand.vmem [shape: f32[32,128], index: 4, kind: input, shape index: {}]   ;;  %s1649_s5 = inlined_call_operand.vmem [shape: f32[1,128], index: 5, kind: input, shape index: {}]   ;;  %s1650_s6 = inlined_call_operand.vmem [shape: f32[32,128], index: 6, kind: output, shape index: {}]  }
   0x1   :  { %v27_v0 = vld [vmem:[%s1644_s1] sm:$0xff]  ;;  %v28_v1 = vld [vmem:[%s1644_s1 + $0x8] sm:$0xff]  ;;  %v29_v2 = vld [vmem:[%s1644_s1 + $0x10] sm:$0xff]  ;;  %1299 = vmatprep.subr.bf16.mxu1 %v1424_v3  ;;  %1197 = vmatprep.mubr.msk.f32.mxu1 %vm1425_vm1, %v1426_v4  ;;  %vm247_vm2 = vcmask 257024  }
   0x2   :  { %v1291_v5 = vpack.c.bf16 %v28_v1, %v27_v0  ;;  %v30_v6 = vld [vmem:[%s1644_s1 + $0x18] sm:$0xff]  ;;  %v23_v7 = vld [vmem:[%s1645_s0] sm:$0xff]  ;;  %v141_v10 = vld [vmem:[%s1646_s2 + $0x8] sm:$0xff] }
   0x3   :  { %v1295_v8 = vpack.c.bf16 %v30_v6, %v29_v2  ;;  %1183 = vmatprep.mubr.msk.f32.mxu0 %vm38_vm0, %v23_v7  ;;  %v140_v9 = vld [vmem:[%s1646_s2] sm:$0xff]  ;;  %v142_v11 = vld [vmem:[%s1646_s2 + $0x10] sm:$0xff]  ;;  %v143_v13 = vld [vmem:[%s1646_s2 + $0x18] sm:$0xff] }
   0x4   :  { %1292 = vmatprep.subr.bf16.mxu0 %v1291_v5  ;;  %v1492_v12 = vpack.c.bf16 %v141_v10, %v140_v9  ;;  %v1498_v14 = vpack.c.bf16 %v143_v13, %v142_v11  ;;  %v24_v15 = vld [vmem:[%s1645_s0 + $0x8] sm:$0xff]  ;;  %v1094_v16 = vld [vmem:[%s1647_s3] ss:$0 sm:$0xff]  ;;  %s1428_s3 = smov 32   ;;  %v25_v35 = vld [vmem:[%s1645_s0 + $0x10] sm:$0xff] }
   0x5   :  { %1294 = vmatpush3.bf16.msra.mxu0 %v1291_v5  ;;  %v26_v36 = vld [vmem:[%s1645_s0 + $0x18] sm:$0xff] }
   0x6   :  { %1296 = vmatprep.subr.bf16.mxu0 %v1295_v8  ;;  %1301 = vmatpush3.bf16.msra.mxu1 %v1492_v12 }
   0x7   :  { %1302 = vmatprep.subr.bf16.mxu1 %v1424_v3 }
   0x9   :  { %1298 = vmatpush3.bf16.msra.mxu0 %v1295_v8 }
   0xa   :  { %1304 = vmatpush3.bf16.msra.mxu1 %v1498_v14  ;;  %1305 = vmatprep.subr.bf16.mxu0 %v1424_v3 }
   0xb   :  { %1311 = vmatprep.subr.bf16.mxu1 %v1424_v3 }
   0xc   :  { %1184 = vmatmul.mubr.msk.f32.vlgmr.msra.gmra.mrb[0].mxu0 %vm38_vm0, %v24_v15 }
   0xd   :  { %1198 = vmatmul.mubr.f32.vlgmr.msra.gmra.mrb[0].mxu1 %v1426_v4  ;;  %1307 = vmatpush3.bf16.msra.mxu0 %v1492_v12 }
   0xe   :  { %1308 = vmatprep.subr.bf16.mxu0 %v1424_v3  ;;  %1313 = vmatpush3.bf16.msra.mxu1 %v1492_v12 }
   0xf   :  { %1314 = vmatprep.subr.bf16.mxu1 %v1424_v3  ;;  %1219 = vmatprep.mubr.msk.f32.mxu1 %vm1425_vm1, %v1426_v4 }
  0x10   :  { %1186 = vmatprep.mubr.msk.f32.mxu0 %vm38_vm0, %v25_v35 }
  0x11   :  { %1310 = vmatpush3.bf16.msra.mxu0 %v1498_v14 }
  0x12   :  { %1316 = vmatpush3.bf16.msra.mxu1 %v1498_v14  ;;  %1317 = vmatprep.subr.bf16.mxu0 %v1424_v3 }
  0x13   :  { %1323 = vmatprep.subr.bf16.mxu1 %v1424_v3  ;;  %1187 = vmatmul.mubr.msk.f32.gmra.mrb[2].mxu0 %vm38_vm0, %v26_v36 }
  0x14   :  { %1208 = vmatprep.mubr.msk.f32.mxu0 %vm1425_vm1, %v1426_v4 }
  0xdf   :  { %v1185_v17 = vpop.f32.mrb[0].mxu0 }
  0xe0   :  { %v123_v18 = vadd.f32 %v1185_v17, %v1094_v16  ;;  %v117_v19 = vpop.f32.mrb[1].mxu0  ;;  %v214_v20 = vpop.f32.mrb[0].mxu1 }
  0xe1   :  { %v118_v21 = vadd.f32 %v1094_v16, %v117_v19  ;;  %v1199_v22 = vpop.f32.mrb[1].mxu1 }
  0xe2   :  { %137 = vst [vmem:[#allocation2 + $0x8] sm:$0xff] %v123_v18 }
  0xe3   :  { %136 = vst [vmem:[#allocation2] sm:$0xff] %v118_v21 }
  0xe6   :  { %v1188_v40 = vpop.f32.mrb[2].mxu0 }
  0xe7   :  { %v133_v41 = vadd.f32 %v1188_v40, %v1094_v16  ;;  %v127_v42 = vpop.f32.mrb[3].mxu0 }
  0xe8   :  { %v128_v43 = vadd.f32 %v1094_v16, %v127_v42 }
  0xe9   :  { %139 = vst [vmem:[#allocation2 + $0x18] sm:$0xff] %v133_v41  ;;  %v352_v63 = vld [vmem:[#allocation2 + $0x8] sm:$0xf]  ;;  %v455_v21 = vld [vmem:[#allocation2 + $0xc] sm:$0xf] }
  0xea   :  { %v144_v23 = vld [vmem:[#allocation2] sm:$0xf]  ;;  %138 = vst [vmem:[#allocation2 + $0x10] sm:$0xff] %v128_v43  ;;  %v249_v45 = vld [vmem:[#allocation2 + $0x4] sm:$0xf] }
  0xeb   :  { %v218_v24 = vadd.f32 %v214_v20, %v144_v23 }
  0xed   :  { %1360 = vtanh.f32 %v218_v24  ;;  %v1099_v26 = vmul.f32 -1.442695, %v218_v24 }
  0xef   :  { %1362 = vpow2.f32 %v1099_v26 }
  0xf7   :  { %v1361_v25 = vpop.eup %1360 }
  0xf8   :  { %228 = vrot.lane.b32.xlu0 %v1361_v25, %s1427_s17 }
  0xf9   :  { %v1363_v27 = vpop.eup %1362 }
  0xfa   :  { %v222_v28 = vadd.f32 1.0, %v1363_v27 }
  0xfc   :  { %1364 = vrcp.f32 %v222_v28 }
 0x106   :  { %v1365_v29 = vpop.eup %1364 }
 0x107   :  { %v226_v32 = vmul.f32 0.0, %v1365_v29 }
 0x16a   :  { %v229_v30 = vpop.permute.xlu0 %228 }
 0x16b   :  { %v231_v31 = vmul.f32 %v1365_v29, %v229_v30 }
 0x16d   :  { %233 = vrot.lane.b32.xlu0 %v231_v31, %s1428_s3 }
 0x1df   :  { %v234_v33 = vpop.permute.xlu0 %233 }
 0x1e0   :  { %v236_v34 = vadd.f32 %v234_v33, %v226_v32 }
 0x1e2   :  { %1366 = vtanh.f32 %v236_v34 }
 0x1ec   :  { %v1367_v37 = vpop.eup %1366 }
 0x1ed   :  { %239 = vrot.lane.b32.xlu1 %v1367_v37, %s1427_s17 }
 0x25f   :  { %v240_v38 = vpop.permute.xlu1 %239 }
 0x260   :  { %v242_v39 = vmul.f32 %v1365_v29, %v240_v38 }
 0x262   :  { %244 = vrot.lane.b32.xlu1 %v242_v39, %s1428_s3  ;;  %v558_v39 = vld [vmem:[#allocation2 + $0x10] sm:$0xf] }
 0x2d4   :  { %v245_v44 = vpop.permute.xlu1 %244 }
 0x2d5   :  { %248 = vst.msk [vmem:[#allocation3] sm:$0xf] %vm247_vm2, %v245_v44  ;;  %1209 = vmatmul.mubr.msk.f32.vlgmr.msra.gmra.mrb[4].mxu0 %vm38_vm0, %v245_v44 }
 0x2d6   :  { %1319 = vmatpush3.bf16.msra.mxu0 %v1492_v12  ;;  %1230 = vmatprep.mubr.msk.f32.mxu0 %vm1425_vm1, %v1426_v4 }
 0x2d7   :  { %1320 = vmatprep.subr.bf16.mxu0 %v1424_v3 }
 0x2da   :  { %1322 = vmatpush3.bf16.msra.mxu0 %v1498_v14 }
 0x2db   :  { %1329 = vmatprep.subr.bf16.mxu0 %v1424_v3 }
 0x3a8   :  { %v318_v46 = vpop.f32.mrb[4].mxu0 }
 0x3a9   :  { %v322_v47 = vadd.f32 %v318_v46, %v249_v45  ;;  %v1210_v48 = vpop.f32.mrb[5].mxu0 }
 0x3ab   :  { %1368 = vtanh.f32 %v322_v47  ;;  %v1101_v50 = vmul.f32 -1.442695, %v322_v47 }
 0x3ad   :  { %1370 = vpow2.f32 %v1101_v50 }
 0x3b5   :  { %v1369_v49 = vpop.eup %1368 }
 0x3b6   :  { %332 = vrot.lane.b32.xlu0 %v1369_v49, %s1427_s17 }
 0x3b7   :  { %v1371_v51 = vpop.eup %1370 }
 0x3b8   :  { %v326_v52 = vadd.f32 1.0, %v1371_v51 }
 0x3ba   :  { %1372 = vrcp.f32 %v326_v52 }
 0x3c4   :  { %v1373_v53 = vpop.eup %1372 }
 0x3c5   :  { %v330_v56 = vmul.f32 %v1373_v53, %v236_v34 }
 0x428   :  { %v333_v54 = vpop.permute.xlu0 %332 }
 0x429   :  { %v335_v55 = vmul.f32 %v1373_v53, %v333_v54 }
 0x42b   :  { %337 = vrot.lane.b32.xlu1 %v335_v55, %s1428_s3 }
 0x49d   :  { %v338_v57 = vpop.permute.xlu1 %337 }
 0x49e   :  { %v340_v58 = vadd.f32 %v338_v57, %v330_v56  ;;  %v661_v57 = vld [vmem:[#allocation2 + $0x14] sm:$0xf] }
 0x4a0   :  { %1374 = vtanh.f32 %v340_v58 }
 0x4aa   :  { %v1375_v59 = vpop.eup %1374 }
 0x4ab   :  { %343 = vrot.lane.b32.xlu0 %v1375_v59, %s1427_s17 }
 0x51d   :  { %v344_v60 = vpop.permute.xlu0 %343 }
 0x51e   :  { %v346_v61 = vmul.f32 %v1373_v53, %v344_v60 }
 0x520   :  { %348 = vrot.lane.b32.xlu1 %v346_v61, %s1428_s3 }
 0x592   :  { %v349_v62 = vpop.permute.xlu1 %348 }
 0x593   :  { %351 = vst.msk [vmem:[#allocation3 + $0x4] sm:$0xf] %vm247_vm2, %v349_v62  ;;  %1220 = vmatmul.mubr.msk.f32.vlgmr.msra.gmra.mrb[2].mxu1 %vm38_vm0, %v349_v62 }
 0x594   :  { %1325 = vmatpush3.bf16.msra.mxu1 %v1492_v12  ;;  %1241 = vmatprep.mubr.msk.f32.mxu1 %vm1425_vm1, %v1426_v4 }
 0x595   :  { %1326 = vmatprep.subr.bf16.mxu1 %v1424_v3 }
 0x598   :  { %1328 = vmatpush3.bf16.msra.mxu1 %v1498_v14 }
 0x599   :  { %1335 = vmatprep.subr.bf16.mxu1 %v1424_v3 }
 0x666   :  { %v421_v0 = vpop.f32.mrb[2].mxu1 }
 0x667   :  { %v425_v1 = vadd.f32 %v421_v0, %v352_v63  ;;  %v1221_v2 = vpop.f32.mrb[3].mxu1 }
 0x669   :  { %1376 = vtanh.f32 %v425_v1  ;;  %v1103_v6 = vmul.f32 -1.442695, %v425_v1 }
 0x66b   :  { %1378 = vpow2.f32 %v1103_v6  ;;  %v979_v6 = vld [vmem:[%s1648_s4 + $0x8] sm:$0xff] }
 0x673   :  { %v1377_v5 = vpop.eup %1376 }
 0x674   :  { %435 = vrot.lane.b32.xlu0 %v1377_v5, %s1427_s17  ;;  %v978_v5 = vld [vmem:[%s1648_s4] sm:$0xff] }
 0x675   :  { %v1379_v7 = vpop.eup %1378 }
 0x676   :  { %v429_v8 = vadd.f32 1.0, %v1379_v7  ;;  %v1347_v7 = vpack.c.bf16 %v979_v6, %v978_v5 }
 0x678   :  { %1380 = vrcp.f32 %v429_v8 }
 0x682   :  { %v1381_v9 = vpop.eup %1380 }
 0x683   :  { %v433_v13 = vmul.f32 %v1381_v9, %v340_v58 }
 0x6e6   :  { %v436_v10 = vpop.permute.xlu0 %435 }
 0x6e7   :  { %v438_v11 = vmul.f32 %v1381_v9, %v436_v10 }
 0x6e9   :  { %440 = vrot.lane.b32.xlu1 %v438_v11, %s1428_s3  ;;  %v980_v11 = vld [vmem:[%s1648_s4 + $0x10] sm:$0xff] }
 0x75b   :  { %v441_v15 = vpop.permute.xlu1 %440 }
 0x75c   :  { %v443_v16 = vadd.f32 %v441_v15, %v433_v13  ;;  %v981_v13 = vld [vmem:[%s1648_s4 + $0x18] sm:$0xff]  ;;  %v970_v15 = vld [vmem:[#allocation3] sm:$0xff] }
 0x75e   :  { %1382 = vtanh.f32 %v443_v16 }
 0x768   :  { %v1383_v17 = vpop.eup %1382 }
 0x769   :  { %446 = vrot.lane.b32.xlu0 %v1383_v17, %s1427_s17 }
 0x7db   :  { %v447_v18 = vpop.permute.xlu0 %446 }
 0x7dc   :  { %v449_v19 = vmul.f32 %v1381_v9, %v447_v18  ;;  %v974_v18 = vmax.f32 %v970_v15, 0.0 }
 0x7de   :  { %451 = vrot.lane.b32.xlu1 %v449_v19, %s1428_s3 }
 0x850   :  { %v452_v20 = vpop.permute.xlu1 %451 }
 0x851   :  { %454 = vst.msk [vmem:[#allocation3 + $0x8] sm:$0xf] %vm247_vm2, %v452_v20  ;;  %1231 = vmatmul.mubr.msk.f32.vlgmr.msra.gmra.mrb[6].mxu0 %vm38_vm0, %v452_v20 }
 0x852   :  { %1331 = vmatpush3.bf16.msra.mxu0 %v1492_v12  ;;  %1252 = vmatprep.mubr.msk.f32.mxu0 %vm1425_vm1, %v1426_v4 }
 0x853   :  { %1332 = vmatprep.subr.bf16.mxu0 %v1424_v3 }
 0x856   :  { %1334 = vmatpush3.bf16.msra.mxu0 %v1498_v14 }
 0x857   :  { %1341 = vmatprep.subr.bf16.mxu0 %v1424_v3 }
 0x924   :  { %v524_v22 = vpop.f32.mrb[6].mxu0 }
 0x925   :  { %v528_v23 = vadd.f32 %v524_v22, %v455_v21  ;;  %v1232_v24 = vpop.f32.mrb[7].mxu0 }
 0x927   :  { %1384 = vtanh.f32 %v528_v23  ;;  %v1105_v26 = vmul.f32 -1.442695, %v528_v23  ;;  %v764_v23 = vld [vmem:[#allocation2 + $0x18] sm:$0xf] }
 0x929   :  { %1386 = vpow2.f32 %v1105_v26 }
 0x931   :  { %v1385_v25 = vpop.eup %1384 }
 0x932   :  { %538 = vrot.lane.b32.xlu0 %v1385_v25, %s1427_s17 }
 0x933   :  { %v1387_v27 = vpop.eup %1386 }
 0x934   :  { %v532_v28 = vadd.f32 1.0, %v1387_v27  ;;  %v1614_v27 = vld [vmem:[%s1649_s5] ss:$0 sm:$0xff] }
 0x936   :  { %1388 = vrcp.f32 %v532_v28 }
 0x940   :  { %v1389_v29 = vpop.eup %1388 }
 0x941   :  { %v536_v32 = vmul.f32 %v1389_v29, %v443_v16  ;;  %v1351_v16 = vpack.c.bf16 %v981_v13, %v980_v11 }
 0x9a4   :  { %v539_v30 = vpop.permute.xlu0 %538 }
 0x9a5   :  { %v541_v31 = vmul.f32 %v1389_v29, %v539_v30 }
 0x9a7   :  { %543 = vrot.lane.b32.xlu1 %v541_v31, %s1428_s3 }
 0xa19   :  { %v544_v33 = vpop.permute.xlu1 %543 }
 0xa1a   :  { %v546_v34 = vadd.f32 %v544_v33, %v536_v32 }
 0xa1c   :  { %1390 = vtanh.f32 %v546_v34 }
 0xa26   :  { %v1391_v35 = vpop.eup %1390 }
 0xa27   :  { %549 = vrot.lane.b32.xlu0 %v1391_v35, %s1427_s17 }
 0xa99   :  { %v550_v36 = vpop.permute.xlu0 %549 }
 0xa9a   :  { %v552_v37 = vmul.f32 %v1389_v29, %v550_v36 }
 0xa9c   :  { %554 = vrot.lane.b32.xlu1 %v552_v37, %s1428_s3 }
 0xb0e   :  { %v555_v38 = vpop.permute.xlu1 %554 }
 0xb0f   :  { %557 = vst.msk [vmem:[#allocation3 + $0xc] sm:$0xf] %vm247_vm2, %v555_v38  ;;  %1242 = vmatmul.mubr.msk.f32.vlgmr.msra.gmra.mrb[4].mxu1 %vm38_vm0, %v555_v38 }
 0xb10   :  { %1337 = vmatpush3.bf16.msra.mxu1 %v1492_v12  ;;  %1263 = vmatprep.mubr.msk.f32.mxu1 %vm1425_vm1, %v1426_v4 }
 0xb11   :  { %1338 = vmatprep.subr.bf16.mxu1 %v1424_v3 }
 0xb14   :  { %1340 = vmatpush3.bf16.msra.mxu1 %v1498_v14 }
 0xb15   :  { %1348 = vmatprep.subr.bf16.mxu1 %v1347_v7 }
 0xb16   :  { %v971_v19 = vld [vmem:[#allocation3 + $0x8] sm:$0xff] }
 0xb17   :  { %v975_v20 = vmax.f32 %v971_v19, 0.0 }
 0xbe2   :  { %v627_v40 = vpop.f32.mrb[4].mxu1 }
 0xbe3   :  { %v631_v41 = vadd.f32 %v627_v40, %v558_v39  ;;  %v1243_v42 = vpop.f32.mrb[5].mxu1 }
 0xbe5   :  { %1392 = vtanh.f32 %v631_v41  ;;  %v1107_v44 = vmul.f32 -1.442695, %v631_v41 }
 0xbe7   :  { %1394 = vpow2.f32 %v1107_v44 }
 0xbef   :  { %v1393_v43 = vpop.eup %1392 }
 0xbf0   :  { %641 = vrot.lane.b32.xlu0 %v1393_v43, %s1427_s17 }
 0xbf1   :  { %v1395_v45 = vpop.eup %1394 }
 0xbf2   :  { %v635_v46 = vadd.f32 1.0, %v1395_v45 }
 0xbf4   :  { %1396 = vrcp.f32 %v635_v46  ;;  %v867_v46 = vld [vmem:[#allocation2 + $0x1c] sm:$0xf] }
 0xbfe   :  { %v1397_v47 = vpop.eup %1396 }
 0xbff   :  { %v639_v50 = vmul.f32 %v1397_v47, %v546_v34 }
 0xc62   :  { %v642_v48 = vpop.permute.xlu0 %641 }
 0xc63   :  { %v644_v49 = vmul.f32 %v1397_v47, %v642_v48 }
 0xc65   :  { %646 = vrot.lane.b32.xlu1 %v644_v49, %s1428_s3 }
 0xcd7   :  { %v647_v51 = vpop.permute.xlu1 %646 }
 0xcd8   :  { %v649_v52 = vadd.f32 %v647_v51, %v639_v50 }
 0xcda   :  { %1398 = vtanh.f32 %v649_v52 }
 0xce4   :  { %v1399_v53 = vpop.eup %1398 }
 0xce5   :  { %652 = vrot.lane.b32.xlu0 %v1399_v53, %s1427_s17 }
 0xd57   :  { %v653_v54 = vpop.permute.xlu0 %652 }
 0xd58   :  { %v655_v55 = vmul.f32 %v1397_v47, %v653_v54 }
 0xd5a   :  { %657 = vrot.lane.b32.xlu1 %v655_v55, %s1428_s3 }
 0xdcc   :  { %v658_v56 = vpop.permute.xlu1 %657 }
 0xdcd   :  { %660 = vst.msk [vmem:[#allocation3 + $0x10] sm:$0xf] %vm247_vm2, %v658_v56  ;;  %1253 = vmatmul.mubr.msk.f32.vlgmr.msra.gmra.mrb[8].mxu0 %vm38_vm0, %v658_v56 }
 0xdce   :  { %1343 = vmatpush3.bf16.msra.mxu0 %v1492_v12  ;;  %1274 = vmatprep.mubr.msk.f32.mxu0 %vm1425_vm1, %v1426_v4 }
 0xdcf   :  { %1344 = vmatprep.subr.bf16.mxu0 %v1424_v3 }
 0xdd2   :  { %1346 = vmatpush3.bf16.msra.mxu0 %v1498_v14 }
 0xea0   :  { %v730_v58 = vpop.f32.mrb[8].mxu0 }
 0xea1   :  { %v734_v59 = vadd.f32 %v730_v58, %v661_v57  ;;  %v1254_v60 = vpop.f32.mrb[9].mxu0 }
 0xea3   :  { %1400 = vtanh.f32 %v734_v59  ;;  %v1109_v62 = vmul.f32 -1.442695, %v734_v59 }
 0xea5   :  { %1402 = vpow2.f32 %v1109_v62 }
 0xead   :  { %v1401_v61 = vpop.eup %1400 }
 0xeae   :  { %744 = vrot.lane.b32.xlu0 %v1401_v61, %s1427_s17 }
 0xeaf   :  { %v1403_v63 = vpop.eup %1402 }
 0xeb0   :  { %v738_v0 = vadd.f32 1.0, %v1403_v63 }
 0xeb2   :  { %1404 = vrcp.f32 %v738_v0 }
 0xebc   :  { %v1405_v12 = vpop.eup %1404 }
 0xebd   :  { %v742_v3 = vmul.f32 %v1405_v12, %v649_v52 }
 0xf20   :  { %v745_v1 = vpop.permute.xlu0 %744 }
 0xf21   :  { %v747_v4 = vmul.f32 %v1405_v12, %v745_v1 }
 0xf23   :  { %749 = vrot.lane.b32.xlu1 %v747_v4, %s1428_s3 }
 0xf95   :  { %v750_v14 = vpop.permute.xlu1 %749 }
 0xf96   :  { %v752_v2 = vadd.f32 %v750_v14, %v742_v3 }
 0xf98   :  { %1406 = vtanh.f32 %v752_v2 }
 0xfa2   :  { %v1407_v8 = vpop.eup %1406 }
 0xfa3   :  { %755 = vrot.lane.b32.xlu0 %v1407_v8, %s1427_s17 }
0x1015   :  { %v756_v9 = vpop.permute.xlu0 %755 }
0x1016   :  { %v758_v10 = vmul.f32 %v1405_v12, %v756_v9 }
0x1018   :  { %760 = vrot.lane.b32.xlu1 %v758_v10, %s1428_s3 }
0x108a   :  { %v761_v17 = vpop.permute.xlu1 %760 }
0x108b   :  { %763 = vst.msk [vmem:[#allocation3 + $0x14] sm:$0xf] %vm247_vm2, %v761_v17  ;;  %1264 = vmatmul.mubr.msk.f32.vlgmr.msra.gmra.mrb[6].mxu1 %vm38_vm0, %v761_v17 }
0x108c   :  { %1350 = vmatpush3.bf16.msra.mxu1 %v1347_v7  ;;  %1285 = vmatprep.mubr.msk.f32.mxu1 %vm38_vm0, %v974_v18 }
0x108d   :  { %1352 = vmatprep.subr.bf16.mxu1 %v1351_v16 }
0x1090   :  { %1354 = vmatpush3.bf16.msra.mxu1 %v1351_v16 }
0x1092   :  { %v972_v21 = vld [vmem:[#allocation3 + $0x10] sm:$0xff] }
0x1093   :  { %1286 = vmatmul.mubr.msk.f32.vlgmr.msra.gmra.mrb[8].mxu1 %vm38_vm0, %v975_v20  ;;  %v976_v22 = vmax.f32 %v972_v21, 0.0 }
0x1095   :  { %1288 = vmatprep.mubr.msk.f32.mxu1 %vm38_vm0, %v976_v22 }
0x115e   :  { %v833_v24 = vpop.f32.mrb[6].mxu1 }
0x115f   :  { %v837_v25 = vadd.f32 %v833_v24, %v764_v23  ;;  %v1265_v26 = vpop.f32.mrb[7].mxu1 }
0x1161   :  { %1408 = vtanh.f32 %v837_v25  ;;  %v1111_v33 = vmul.f32 -1.442695, %v837_v25 }
0x1163   :  { %1410 = vpow2.f32 %v1111_v33 }
0x1166   :  { %v1287_v28 = vpop.f32.mrb[8].mxu1 }
0x1167   :  { %v1073_v29 = vadd.f32 %v1287_v28, %v1614_v27  ;;  %v1067_v30 = vpop.f32.mrb[9].mxu1 }
0x1168   :  { %v1068_v31 = vadd.f32 %v1614_v27, %v1067_v30 }
0x1169   :  { %1087 = vst [vmem:[%s1650_s6 + $0x8] sm:$0xff] %v1073_v29 }
0x116a   :  { %1086 = vst [vmem:[%s1650_s6] sm:$0xff] %v1068_v31 }
0x116b   :  { %v1409_v32 = vpop.eup %1408 }
0x116c   :  { %847 = vrot.lane.b32.xlu0 %v1409_v32, %s1427_s17 }
0x116d   :  { %v1411_v34 = vpop.eup %1410 }
0x116e   :  { %v841_v35 = vadd.f32 1.0, %v1411_v34 }
0x1170   :  { %1412 = vrcp.f32 %v841_v35 }
0x117a   :  { %v1413_v36 = vpop.eup %1412 }
0x117b   :  { %v845_v39 = vmul.f32 %v1413_v36, %v752_v2 }
0x11de   :  { %v848_v37 = vpop.permute.xlu0 %847 }
0x11df   :  { %v850_v38 = vmul.f32 %v1413_v36, %v848_v37 }
0x11e1   :  { %852 = vrot.lane.b32.xlu1 %v850_v38, %s1428_s3 }
0x1253   :  { %v853_v40 = vpop.permute.xlu1 %852 }
0x1254   :  { %v855_v41 = vadd.f32 %v853_v40, %v845_v39 }
0x1256   :  { %1414 = vtanh.f32 %v855_v41 }
0x1260   :  { %v1415_v42 = vpop.eup %1414 }
0x1261   :  { %858 = vrot.lane.b32.xlu0 %v1415_v42, %s1427_s17 }
0x12d3   :  { %v859_v43 = vpop.permute.xlu0 %858 }
0x12d4   :  { %v861_v44 = vmul.f32 %v1413_v36, %v859_v43 }
0x12d6   :  { %863 = vrot.lane.b32.xlu1 %v861_v44, %s1428_s3 }
0x1348   :  { %v864_v45 = vpop.permute.xlu1 %863 }
0x1349   :  { %866 = vst.msk [vmem:[#allocation3 + $0x18] sm:$0xf] %vm247_vm2, %v864_v45  ;;  %1275 = vmatmul.mubr.msk.f32.vlgmr.msra.gmra.mrb[10].mxu0 %vm38_vm0, %v864_v45 }
0x141c   :  { %v936_v47 = vpop.f32.mrb[10].mxu0 }
0x141d   :  { %v940_v48 = vadd.f32 %v936_v47, %v867_v46  ;;  %v1276_v49 = vpop.f32.mrb[11].mxu0 }
0x141f   :  { %1416 = vtanh.f32 %v940_v48  ;;  %v1113_v51 = vmul.f32 -1.442695, %v940_v48 }
0x1421   :  { %1418 = vpow2.f32 %v1113_v51 }
0x1429   :  { %v1417_v50 = vpop.eup %1416 }
0x142a   :  { %950 = vrot.lane.b32.xlu0 %v1417_v50, %s1427_s17 }
0x142b   :  { %v1419_v52 = vpop.eup %1418 }
0x142c   :  { %v944_v53 = vadd.f32 1.0, %v1419_v52 }
0x142e   :  { %1420 = vrcp.f32 %v944_v53 }
0x1438   :  { %v1421_v54 = vpop.eup %1420 }
0x1439   :  { %v948_v57 = vmul.f32 %v1421_v54, %v855_v41 }
0x149c   :  { %v951_v55 = vpop.permute.xlu0 %950 }
0x149d   :  { %v953_v56 = vmul.f32 %v1421_v54, %v951_v55 }
0x149f   :  { %955 = vrot.lane.b32.xlu1 %v953_v56, %s1428_s3 }
0x1511   :  { %v956_v58 = vpop.permute.xlu1 %955 }
0x1512   :  { %v958_v59 = vadd.f32 %v956_v58, %v948_v57 }
0x1514   :  { %1422 = vtanh.f32 %v958_v59 }
0x151e   :  { %v1423_v60 = vpop.eup %1422 }
0x151f   :  { %961 = vrot.lane.b32.xlu0 %v1423_v60, %s1427_s17 }
0x1591   :  { %v962_v61 = vpop.permute.xlu0 %961 }
0x1592   :  { %v964_v62 = vmul.f32 %v1421_v54, %v962_v61 }
0x1594   :  { %966 = vrot.lane.b32.xlu1 %v964_v62, %s1428_s3 }
0x1606   :  { %v967_v63 = vpop.permute.xlu1 %966 }
0x1607   :  { %969 = vst.msk [vmem:[#allocation3 + $0x1c] sm:$0xf] %vm247_vm2, %v967_v63 }
0x160e   :  { %v973_v0 = vld [vmem:[#allocation3 + $0x18] sm:$0xff] }
0x160f   :  { %v977_v12 = vmax.f32 %v973_v0, 0.0 }
0x1611   :  { %1289 = vmatmul.mubr.msk.f32.gmra.mrb[10].mxu1 %vm38_vm0, %v977_v12 }
0x16e4   :  { %v1290_v1 = vpop.f32.mrb[10].mxu1 }
0x16e5   :  { %v1083_v4 = vadd.f32 %v1290_v1, %v1614_v27  ;;  %v1077_v3 = vpop.f32.mrb[11].mxu1 }
0x16e6   :  { %v1078_v14 = vadd.f32 %v1614_v27, %v1077_v3 }
0x16e7   :  { %1089 = vst [vmem:[%s1650_s6 + $0x18] sm:$0xff] %v1083_v4 }
0x16e8   :  { %1088 = vst [vmem:[%s1650_s6 + $0x10] sm:$0xff] %v1078_v14 }

</bundles_post_ra>
